<compile_context>
chip_gen: v5e
topology: v5e:2x2
jax: 0.10.0
libtpu: 0.0.40
codegen_flags: <defaults>
</compile_context>

<pallas_src>
import functools

import jax
import jax.numpy as jnp
from jax.experimental import pallas as pl
from jax.experimental.pallas import tpu as pltpu


def _pool_kernel(g_lo_ref, g_hi_ref, b_ref, x_ref, o_ref, *scratch,
                 reduce, n_rows, tile_n, g_pad, acc_in_out, sum_via_matmul,
                 f32_matmul):
    ni = pl.program_id(1)                     # node-tile axis (innermost, reduction)
    last = pl.num_programs(1) - 1
    acc_ref = o_ref if acc_in_out else scratch[0]

    @pl.when(ni == 0)
    def _init():
        if reduce == "max":
            acc_ref[...] = jnp.full(acc_ref.shape, -jnp.inf, acc_ref.dtype)
        else:
            acc_ref[...] = jnp.zeros(acc_ref.shape, acc_ref.dtype)

    # The last node tile may be partial: its tail rows hold stale VMEM.  Zero
    # them before the matmul (0 * NaN = NaN would otherwise propagate).
    rem = n_rows % tile_n
    if reduce == "sum" and sum_via_matmul and rem != 0:
        @pl.when(ni == last)
        def _zero_tail():
            rows = jax.lax.broadcasted_iota(jnp.int32, x_ref.shape, 0)
            x_ref[...] = jnp.where(rows < rem, x_ref[...],
                                   jnp.zeros((), x_ref.dtype))

    x = x_ref[...]                            # (tile_n, tile_f), input dtype

    if reduce == "sum" and sum_via_matmul:
        # Lane-dense ids (1, tile_n); transposed one-hot (g_pad, tile_n) built
        # directly (no XLU transpose); one MXU matmul contracts over nodes.
        b = b_ref[...]
        gids = jax.lax.broadcasted_iota(jnp.int32, (g_pad, b.shape[1]), 0)
        m = (gids == b).astype(x.dtype)
        prec = jax.lax.Precision.HIGHEST if f32_matmul else None
        acc_ref[...] += jnp.dot(m, x, preferred_element_type=jnp.float32,
                                precision=prec).astype(acc_ref.dtype)
    else:
        # Loop only over the graphs present in this tile ([g_lo, g_hi] comes
        # from SMEM scalar prefetch).  Sentinel ids on padded rows never match,
        # so stale tail rows are masked away by the select (no arithmetic).
        b = b_ref[...]                        # (tile_n, 1) int32 column
        lo = g_lo_ref[ni]
        hi = g_hi_ref[ni]

        if reduce == "max":
            minval = jnp.array(-jnp.inf, dtype=x.dtype)

            def body(g, carry):
                rmax = jnp.max(jnp.where(b == g, x, minval),
                               axis=0, keepdims=True)          # (1, tile_f)
                row = acc_ref[pl.ds(g, 1), :]
                acc_ref[pl.ds(g, 1), :] = jnp.maximum(row,
                                                      rmax.astype(acc_ref.dtype))
                return carry
        else:  # tiny-N sum fallback (keeps the MXU path 128-aligned elsewhere)
            def body(g, carry):
                rsum = jnp.sum(jnp.where(b == g, x, jnp.zeros((), x.dtype)),
                               axis=0, keepdims=True, dtype=jnp.float32)
                row = acc_ref[pl.ds(g, 1), :]
                acc_ref[pl.ds(g, 1), :] = row + rsum.astype(acc_ref.dtype)
                return carry

        jax.lax.fori_loop(lo, hi + 1, body, 0)

    if not acc_in_out:
        @pl.when(ni == last)
        def _finalize():
            o_ref[...] = acc_ref[...].astype(o_ref.dtype)


def reduce_readout_pyg(node_feat, batch, num_graphs, op="mean",
                       tile_n=1024, tile_f=512):
    """Pallas equivalent of ReduceReadOutPYG(op=op, field='node_feat').forward.

    node_feat: [N, F] float array
    batch:     [N] int array of graph ids in [0, num_graphs)
    returns:   [num_graphs, F] pooled features
    """
    if op not in ("mean", "sum", "max"):
        raise ValueError("op must be 'mean', 'sum', or 'max'")
    node_feat = jnp.asarray(node_feat)
    batch = jnp.asarray(batch)
    if not jnp.issubdtype(node_feat.dtype, jnp.floating):
        node_feat = node_feat.astype(jnp.float32)   # v7x MXU has no int path
    n, f = node_feat.shape
    dtype = node_feat.dtype
    itemsize = jnp.dtype(dtype).itemsize
    num_graphs = int(num_graphs)

    # ---- feature (lane) tiling: 128-multiples, >=2 tiles when F >= 256 -----
    if f <= 128:
        tile_f = f                                   # full-dim block
    else:
        f_ceil = pl.cdiv(f, 128) * 128
        tile_f = min(max(128, (tile_f // 128) * 128), f_ceil)
        if tile_f >= f_ceil:                         # would be a single F tile
            tile_f = max(128, ((f_ceil // 2) // 128) * 128)   # split for v7x TCs
    num_f_tiles = pl.cdiv(f, tile_f)

    # ---- graph (sublane) padding of the accumulator/output -----------------
    g_pad = max(pl.cdiv(num_graphs, 8) * 8, 8)

    # ---- node (contraction) tiling, generation-aware VMEM budget -----------
    try:
        vmem_cap = int(pltpu.get_tpu_info().vmem_capacity_bytes)
    except Exception:
        vmem_cap = 64 * 1024 * 1024                  # conservative (v7x per-TC)
    budget = int(vmem_cap * 0.6)

    tile_n = max(256, (tile_n // 128) * 128)

    def _vmem_est(tn):
        return (4 * g_pad * tile_f                   # f32 accumulator / resident out
                + 2 * g_pad * tile_f * itemsize      # output block
                + 2 * tn * tile_f * itemsize         # double-buffered feature tile
                + 4 * tn * 4 * 2)                    # id tiles
    while _vmem_est(tile_n) > budget and tile_n > 256:
        tile_n = max(256, ((tile_n // 2) // 128) * 128)

    if n < 128:
        tile_n = n                                   # single tiny tile -> loop path
    elif n < tile_n:
        tile_n = (n // 128) * 128                    # keep MXU contraction 128-aligned
    num_n_tiles = pl.cdiv(n, tile_n)
    n_pad = num_n_tiles * tile_n
    sum_via_matmul = (tile_n % 128 == 0)

    # Only the (tiny) batch vector is padded; node_feat streams untouched.
    b32 = batch.astype(jnp.int32)
    if n_pad != n:
        b32 = jnp.pad(b32, (0, n_pad - n), constant_values=g_pad)   # sentinel id

    # Per-node-tile [g_lo, g_hi] (graphs actually present) for scalar prefetch.
    b_t = b32.reshape(num_n_tiles, tile_n)
    valid = b_t < num_graphs
    g_lo = jnp.where(valid, b_t, num_graphs).min(axis=1).astype(jnp.int32)
    g_hi = jnp.where(valid, b_t, -1).max(axis=1).astype(jnp.int32)

    reduce = "max" if op == "max" else "sum"
    if reduce == "sum" and sum_via_matmul:
        b_in = b32[None, :]                                          # (1, n_pad)
        b_spec = pl.BlockSpec((1, tile_n), lambda fi, ni, lo, hi: (0, ni))
    else:
        b_in = b32[:, None]                                          # (n_pad, 1)
        b_spec = pl.BlockSpec((tile_n, 1), lambda fi, ni, lo, hi: (ni, 0))

    acc_in_out = (dtype == jnp.float32)
    scratch_shapes = [] if acc_in_out else [pltpu.VMEM((g_pad, tile_f), jnp.float32)]

    kernel = functools.partial(
        _pool_kernel, reduce=reduce, n_rows=n, tile_n=tile_n, g_pad=g_pad,
        acc_in_out=acc_in_out, sum_via_matmul=sum_via_matmul,
        f32_matmul=(dtype == jnp.float32))

    vmem_limit = int(min(max(int(1.5 * _vmem_est(tile_n)) + (4 << 20), 32 << 20),
                         max(budget, 32 << 20)))

    out = pl.pallas_call(
        kernel,
        out_shape=jax.ShapeDtypeStruct((g_pad, f), dtype),
        grid_spec=pltpu.PrefetchScalarGridSpec(
            num_scalar_prefetch=2,
            grid=(num_f_tiles, num_n_tiles),
            in_specs=[
                b_spec,                                              # graph ids
                pl.BlockSpec((tile_n, tile_f), lambda fi, ni, lo, hi: (ni, fi)),
            ],
            out_specs=pl.BlockSpec((g_pad, tile_f), lambda fi, ni, lo, hi: (0, fi)),
            scratch_shapes=scratch_shapes,
        ),
        compiler_params=pltpu.CompilerParams(
            dimension_semantics=("parallel", "arbitrary"),
            vmem_limit_bytes=vmem_limit),
    )(g_lo, g_hi, b_in, node_feat)

    out = out[:num_graphs, :]
    if op == "mean":
        counts = jnp.zeros((num_graphs,), jnp.float32).at[batch].add(1.0)
        out = (out.astype(jnp.float32)
               / jnp.maximum(counts, 1.0)[:, None]).astype(dtype)
    return out


class ReduceReadOutPYG:
    """Pallas mirror of matgl's ReduceReadOutPYG (field='node_feat')."""

    def __init__(self, op: str = "mean", field: str = "node_feat"):
        if op not in ("mean", "sum", "max"):
            raise ValueError("op must be 'mean', 'sum', or 'max'")
        if field not in ("node_feat",):
            raise ValueError("field must be 'node_feat'")
        self.op = op
        self.field = field

    def __call__(self, node_feat, batch, num_graphs):
        return reduce_readout_pyg(node_feat, batch, num_graphs, op=self.op)


if __name__ == "__main__":
    key = jax.random.PRNGKey(0)

    def ref_pool(x, b, g, op):
        if op == "sum":
            return jax.ops.segment_sum(x, b, num_segments=g)
        if op == "mean":
            s = jax.ops.segment_sum(x, b, num_segments=g)
            c = jax.ops.segment_sum(jnp.ones((x.shape[0], 1), jnp.float32), b,
                                    num_segments=g)
            return s / jnp.maximum(c, 1.0)
        return jax.ops.segment_max(x, b, num_segments=g)

    ok = True
    # (N, F, G): tiny ragged case (loop path) + a tile-spanning case
    # (ragged last node tile, two F tiles on the parallel axis, MXU one-hot).
    cases = [(12, 32, 2), (1100, 256, 5)]
    for (N, F, G) in cases:
        kx, key = jax.random.split(key)
        node_feat = jax.random.normal(kx, (N, F), dtype=jnp.float32)
        batch = jnp.minimum((jnp.arange(N) * G) // N, G - 1).astype(jnp.int32)
        for op in ("mean", "sum", "max"):
            mod = ReduceReadOutPYG(op=op)
            out = jax.block_until_ready(mod(node_feat, batch, G))
            ref = ref_pool(node_feat, batch, G, op)
            tol = 1e-5 if op == "max" else 1e-3
            ok &= bool(jnp.allclose(out, ref, atol=tol, rtol=tol))

    print("KERNEL_OK" if ok else "KERNEL_MISMATCH")
</pallas_src>

<mosaic_0001>
module attributes {stable_mosaic.version = 11 : i64} {
  func.func @_pool_kernel(%arg0: i32, %arg1: i32, %arg2: memref<1xi32, #tpu.memory_space<smem>>, %arg3: memref<1xi32, #tpu.memory_space<smem>>, %arg4: memref<12x1xi32, #tpu.memory_space<vmem>>, %arg5: memref<12x32xf32, #tpu.memory_space<vmem>>, %arg6: memref<8x32xf32, #tpu.memory_space<vmem>>) attributes {dimension_semantics = [#tpu.dimension_semantics<parallel>, #tpu.dimension_semantics<arbitrary>], iteration_bounds = array<i64: 1, 1>, scalar_prefetch = 2 : i64, scratch_operands = 0 : i64, tpu.core_type = #tpu.core_type<tc>, window_params = [{transform_indices = @transform_0, window_bounds = array<i64: 12, 1>}, {transform_indices = @transform_1, window_bounds = array<i64: 12, 32>}, {transform_indices = @transform_2, window_bounds = array<i64: 8, 32>}]} {
    %c0_i32 = arith.constant 0 : i32
    %0 = arith.cmpi eq, %arg1, %c0_i32 : i32
    %1 = arith.extui %0 : i1 to i32
    %c0_i32_0 = arith.constant 0 : i32
    %2 = arith.cmpi ne, %1, %c0_i32_0 : i32
    scf.if %2 {
      %cst = arith.constant 0.000000e+00 : f32
      %12 = vector.broadcast %cst : f32 to vector<8x32xf32>
      %c0_6 = arith.constant 0 : index
      %c0_7 = arith.constant 0 : index
      %13 = vector.load %arg6[%c0_6, %c0_7] : memref<8x32xf32, #tpu.memory_space<vmem>>, vector<8x32xf32>
      tpu.vector_store %arg6[%c0_6, %c0_7], %12 {strides = array<i32>} : memref<8x32xf32, #tpu.memory_space<vmem>>, vector<8x32xf32>,
    } else {
    }
    %c0 = arith.constant 0 : index
    %c0_1 = arith.constant 0 : index
    %3 = vector.load %arg5[%c0, %c0_1] : memref<12x32xf32, #tpu.memory_space<vmem>>, vector<12x32xf32>
    %c0_2 = arith.constant 0 : index
    %c0_3 = arith.constant 0 : index
    %4 = vector.load %arg4[%c0_2, %c0_3] : memref<12x1xi32, #tpu.memory_space<vmem>>, vector<12x1xi32>
    %5 = arith.index_cast %arg1 : i32 to index
    %6 = memref.load %arg2[%5] : memref<1xi32, #tpu.memory_space<smem>>
    %7 = arith.index_cast %arg1 : i32 to index
    %8 = memref.load %arg3[%7] : memref<1xi32, #tpu.memory_space<smem>>
    %c1_i32 = arith.constant 1 : i32
    %9 = arith.addi %8, %c1_i32 : i32
    %c0_i32_4 = arith.constant 0 : i32
    %10 = arith.subi %9, %6 : i32
    %11 = arith.addi %6, %10 : i32
    %c1_i32_5 = arith.constant 1 : i32
    scf.for %arg7 = %6 to %11 step %c1_i32_5  : i32 {
      %12 = vector.broadcast %arg7 : i32 to vector<12x1xi32>
      %13 = arith.cmpi eq, %4, %12 : vector<12x1xi32>
      %cst = arith.constant 0.000000e+00 : f32
      %14 = vector.shape_cast %13 : vector<12x1xi1> to vector<12x1xi1>
      %15 = vector.broadcast %14 : vector<12x1xi1> to vector<12x32xi1>
      %16 = vector.broadcast %cst : f32 to vector<12x32xf32>
      %17 = arith.select %15, %3, %16 : vector<12x32xi1>, vector<12x32xf32>
      %cst_6 = arith.constant dense<0.000000e+00> : vector<32xf32>
      %18 = vector.multi_reduction <add>, %17, %cst_6 [0] : vector<12x32xf32> to vector<32xf32>
      %19 = vector.shape_cast %18 : vector<32xf32> to vector<1x32xf32>
      %20 = arith.index_cast %arg7 : i32 to index
      %c0_7 = arith.constant 0 : index
      %21 = vector.load %arg6[%20, %c0_7] : memref<8x32xf32, #tpu.memory_space<vmem>>, vector<1x32xf32>
      %22 = arith.addf %21, %19 : vector<1x32xf32>
      %23 = arith.index_cast %arg7 : i32 to index
      %c0_8 = arith.constant 0 : index
      %24 = vector.load %arg6[%23, %c0_8] : memref<8x32xf32, #tpu.memory_space<vmem>>, vector<1x32xf32>
      tpu.vector_store %arg6[%23, %c0_8], %22 {strides = array<i32>} : memref<8x32xf32, #tpu.memory_space<vmem>>, vector<1x32xf32>,
    }
    return
  }
  func.func @transform_0(%arg0: i32, %arg1: i32, %arg2: memref<1xi32, #tpu.memory_space<smem>>, %arg3: memref<1xi32, #tpu.memory_space<smem>>) -> (i32, i32) {
    %c0_i32 = arith.constant 0 : i32
    %c0_i32_0 = arith.constant 0 : i32
    return %arg1, %c0_i32 : i32, i32
  }
  func.func @transform_1(%arg0: i32, %arg1: i32, %arg2: memref<1xi32, #tpu.memory_space<smem>>, %arg3: memref<1xi32, #tpu.memory_space<smem>>) -> (i32, i32) {
    %c0_i32 = arith.constant 0 : i32
    return %arg1, %arg0 : i32, i32
  }
  func.func @transform_2(%arg0: i32, %arg1: i32, %arg2: memref<1xi32, #tpu.memory_space<smem>>, %arg3: memref<1xi32, #tpu.memory_space<smem>>) -> (i32, i32) {
    %c0_i32 = arith.constant 0 : i32
    %c0_i32_0 = arith.constant 0 : i32
    return %c0_i32, %arg0 : i32, i32
  }
}

</mosaic_0001>

<bundles_post_ra>
// kernel: tpu_custom_call.1
= control target key start
LH: loop header
LB: loop body
LE: loop exit
PB: predicated region body
PF: predicated region fallthrough
CT: control target
= control target key end

     0   :  { %11 = vsyncpa [#allocation6], 0  ;;  %vm20_vm0 = vcmask 261120   ;;  %v134_v2 = vmov 0.0   ;;  %s206_s0 = inlined_call_operand.<no memory space> [shape: s32[1], index: 0, kind: input, shape index: {}]   ;;  %s207_s1 = inlined_call_operand.<no memory space> [shape: s32[1], index: 1, kind: input, shape index: {}]   ;;  %s208_s2 = inlined_call_operand.vmem [shape: s32[12,1], index: 2, kind: input, shape index: {}]   ;;  %s209_s3 = inlined_call_operand.vmem [shape: f32[12,32], index: 3, kind: input, shape index: {}]   ;;  %s210_s4 = inlined_call_operand.hbm [shape: f32[8,32], index: 4, kind: output, shape index: {}]  }
   0x1   :  { %v22_v0 = vld [vmem:[%s209_s3] sm:$0xff]  ;;  %21 = vst.msk [vmem:[#allocation5] sm:$0xff] %vm20_vm0, %v134_v2  ;;  %v23_v3 = vld [vmem:[%s209_s3 + $0x8] sm:$0xf]  ;;  %s28_s25 = sadd.s32 1, %s207_s1 }
   0x2   :  { %v24_v1 = vld [vmem:[%s208_s2] sm:$0xff]  ;;  %v25_v4 = vld [vmem:[%s208_s2 + $0x8] sm:$0xf]  ;;  %p84_p0 = scmp.ge.s32.totalorder %s206_s0, %s28_s25 }
   0x4   :  { %85 = sbr.rel (%p84_p0) target bundleno = 155 (0x9b), region = 34 }
   0x9 LB: > { %v135_v5 = vmov 0   ;;  %v35_v6 = vstv %s132_s0  ;;  %vm52_vm4 = vcmask 257024   ;;  %s61_s2 = scalar_lea.vmem [#allocation5], %s132_s0  ;;  %vm64_vm6 = vcmask 253952   ;;  %s32_s0 = sadd.s32 1, %s132_s0   ;;  %s132_s0 = sphi %s206_s0, %s32_s0  }
   0xa   : > { %99 = vset.pattern.permute.xlu0 %v135_v5  ;;  %vm36_vm1 = vcmp.eq.s32.totalorder %v24_v1, %v35_v6  ;;  %vm37_vm2 = vcmp.eq.s32.totalorder %v25_v4, %v35_v6  ;;  %v62_v21 = vld [vmem:[%s61_s2] sm:$0x1]  ;;  %p31_p1 = scmp.ge.s32.totalorder %s32_s0, %s28_s25 }
   0xb   : > { %v38_v7 = vsel %vm36_vm1, 1, %v135_v5  ;;  %v39_v8 = vsel %vm37_vm2, 1, %v135_v5 }
   0xc   : > { %41 = vperm.xlu0 %99, %v38_v7  }
  0x14   : > { %44 = vperm.xlu0 %99, %v39_v8  }
  0x7e   : > { %v42_v9 = vpop.permute.xlu0 %41 }
  0x7f   : > { %vm46_vm3 = vcmp.eq.s32.totalorder %v42_v9, 1 }
  0x80   : > { %v48_v10 = vsel %vm46_vm3, %v22_v0, 0.0 }
  0x81   : > { %v51_v13 = vsel %vm20_vm0, %v48_v10, 0.0 }
  0x86   : > { %v45_v11 = vpop.permute.xlu0 %44 }
  0x87   : > { %vm47_vm5 = vcmp.eq.s32.totalorder %v45_v11, 1 }
  0x88   : > { %v49_v12 = vsel %vm47_vm5, %v23_v3, 0.0 }
  0x89   : > { %v53_v14 = vsel %vm52_vm4, %v49_v12, 0.0 }
  0x8a   : > { %v54_v15 = vadd.f32 %v53_v14, %v51_v13 }
  0x8c   : > { %v55_v16 = vrot.slane %v54_v15, 4 }
  0x8e   : > { %v56_v17 = vadd.f32 %v55_v16, %v54_v15 }
  0x90   : > { %v57_v18 = vrot.slane %v56_v17, 2 }
  0x92   : > { %v58_v19 = vadd.f32 %v57_v18, %v56_v17 }
  0x94   : > { %v59_v20 = vrot.slane %v58_v19, 1 }
  0x96   : > { %v60_v22 = vadd.f32 %v59_v20, %v58_v19  ;;  %34 = sbr.rel (!%p31_p1) target bundleno = 9 (0x9), region = 40 }
  0x98   : > { %v63_v23 = vadd.f32 %v62_v21, %v60_v22 }
  0x9a   : > { %65 = vst.msk [vmem:[%s61_s2] sm:$0x1] %vm64_vm6, %v63_v23 }
  0x9b PF:  { %s73_s9 = sshll.u32 %s210_s4, 4  ;;  %s136_s10 = smov [#allocation5]   ;;  %s74_s9 = int_to_ptr.hbm [resolvable:$true] %s73_s9 }
  0x9c   :  { %s71_s11 = sshll.u32 %s136_s10, 4  ;;  %s72_s11 = int_to_ptr.vmem [resolvable:$true] %s71_s11 }
  0x9d   :  { %76 = dma.vmem_to_hbm [thread:$0]  %s72_s11, 128, %s74_s9, [#allocation6]  }
  0x9e   :  { %128 = dma.done.wait [#allocation6], 128  }
  0x9f   :  { %129 = vsyncadd [#allocation6], 4294967168 }
  0xa0   :  { %81 = vsyncpa [#allocation6], 1 }

</bundles_post_ra>
